<compile_context>
chip_gen: v7x
topology: tpu7x:2x2x1
jax: 0.10.0
libtpu: 0.0.40
codegen_flags: <defaults>
</compile_context>

<pallas_src>
import functools

import jax
import jax.numpy as jnp
from jax import lax
from jax.experimental import pallas as pl
from jax.experimental.pallas import tpu as pltpu


def _round_up(x, m):
    return ((x + m - 1) // m) * m


def _cdiv(a, b):
    return -(-a // b)


def critic_kernel(s_ref, a_ref, w1_ref, w2_ref, wa_ref, bias_ref, wq_ref, out_ref,
                  *, fc1, fc2):
    """One batch tile of the critic.

    s_ref:    (b_tile, S)        state rows
    a_ref:    (b_tile, A)        action rows
    w1_ref:   (S, F1)            fc1 weight (in, out)
    w2_ref:   (F1, F2)           fc2 weight
    wa_ref:   (A, F2)            action_value weight
    bias_ref: (8, max(F1, F2))   row0 = b1, row1 = b2 + ba, row2[0] = bq
    wq_ref:   (8, F2)            q weight replicated across 8 sublanes
    out_ref:  (1, b_tile)        q values, compact lane-major layout
    """
    mx = w1_ref.dtype                        # matmul operand dtype (f32 or bf16)

    b1 = bias_ref[0:1, 0:fc1]
    b2a = bias_ref[1:2, 0:fc2]               # b2 + ba (pre-added at pack time)
    bq = bias_ref[2:3, 0:1]

    # --- fc1 + relu (MXU pass 1, f32 accumulation) --------------------------
    h1 = jnp.dot(s_ref[...].astype(mx), w1_ref[...],
                 preferred_element_type=jnp.float32) + b1
    h1 = jnp.maximum(h1, 0.0)

    # --- fc2(h1) + action_value(action) + relu (MXU passes 2 & 3) -----------
    sav = (jnp.dot(h1.astype(mx), w2_ref[...], preferred_element_type=jnp.float32)
           + jnp.dot(a_ref[...].astype(mx), wa_ref[...],
                     preferred_element_type=jnp.float32)
           + b2a)
    sav = jnp.maximum(sav, 0.0)

    # --- q head, produced directly in lane-major layout ---------------------
    # (8, F2) contracted with (b_tile, F2) on their last dims -> (8, b_tile);
    # all 8 rows are identical (wq replicated), row 0 is stored compactly.
    qmat = lax.dot_general(wq_ref[...], sav, (((1,), (1,)), ((), ())),
                           preferred_element_type=jnp.float32)
    out_ref[...] = (qmat[0:1, :] + bq).astype(out_ref.dtype)


def init_params(key, input_dims, fc1_dims, fc2_dims, n_actions):
    """Synthetic init matching the PyTorch module's Linear shapes."""
    ks = jax.random.split(key, 8)

    def lin(kw, kb, fan_in, fan_out):
        bound = 1.0 / jnp.sqrt(fan_in)
        w = jax.random.uniform(kw, (fan_in, fan_out), jnp.float32, -bound, bound)
        b = jax.random.uniform(kb, (1, fan_out), jnp.float32, -bound, bound)
        return w, b

    w1, b1 = lin(ks[0], ks[1], input_dims, fc1_dims)
    w2, b2 = lin(ks[2], ks[3], fc1_dims, fc2_dims)
    wa, ba = lin(ks[4], ks[5], n_actions, fc2_dims)
    wq, bq = lin(ks[6], ks[7], fc2_dims, 1)
    return dict(w1=w1, b1=b1, w2=w2, b2=b2, wa=wa, ba=ba, wq=wq, bq=bq)


def pack_params(params, *, matmul_dtype=jnp.float32):
    """Pack the 8 Linear tensors into 5 kernel operands (arrays only, jit-safe)."""
    w1, b1 = params["w1"], params["b1"]      # (S, F1), (1, F1)
    w2, b2 = params["w2"], params["b2"]      # (F1, F2), (1, F2)
    wa, ba = params["wa"], params["ba"]      # (A, F2), (1, F2)
    wq, bq = params["wq"], params["bq"]      # (F2, 1), (1, 1)

    fc1 = w1.shape[1]
    fc2 = w2.shape[1]
    width = max(fc1, fc2)

    bias = jnp.zeros((8, width), jnp.float32)
    bias = bias.at[0, 0:fc1].set(b1[0])
    bias = bias.at[1, 0:fc2].set((b2 + ba)[0])
    bias = bias.at[2, 0].set(bq[0, 0])

    wq8 = jnp.tile(wq[:, 0][None, :], (8, 1))          # (8, F2), f32

    return dict(
        w1=w1.astype(matmul_dtype),
        w2=w2.astype(matmul_dtype),
        wa=wa.astype(matmul_dtype),
        bias=bias,
        wq8=wq8,
    )


def _choose_b_tile(B):
    # <= 512 rows: one grid step, b_tile == B -> zero padding and minimum
    # per-step overhead (v5e/v6e have a single TC anyway).  Larger batches:
    # >= 2 tiles (so v7x's second TensorCore gets work), <= 1024 rows each,
    # 128-aligned so the compact (1, b_tile) output block stays lane-dense.
    if B <= 512:
        return B
    n_tiles = max(2, _cdiv(B, 1024))
    return _round_up(_cdiv(B, n_tiles), 128)


def _critic_forward(state, action, packed, *, b_tile=None):
    """Fused critic forward; returns (B, 1) q-values."""
    B, s_dim = state.shape
    a_dim = action.shape[1]
    w1, w2, wa = packed["w1"], packed["w2"], packed["wa"]
    bias, wq8 = packed["bias"], packed["wq8"]
    fc1, fc2 = w1.shape[1], w2.shape[1]

    if b_tile is None:
        b_tile = _choose_b_tile(B)
    b_pad = _round_up(B, b_tile)

    if b_pad != B:
        state = jnp.pad(state, ((0, b_pad - B), (0, 0)))
        action = jnp.pad(action, ((0, b_pad - B), (0, 0)))

    kernel = functools.partial(critic_kernel, fc1=fc1, fc2=fc2)

    w_isz = jnp.dtype(w1.dtype).itemsize
    cost = pl.CostEstimate(
        flops=int(2 * b_pad * (s_dim * fc1 + fc1 * fc2 + a_dim * fc2 + 8 * fc2)),
        transcendentals=0,
        bytes_accessed=int(4 * b_pad * (s_dim + a_dim)
                           + w_isz * (w1.size + w2.size + wa.size)
                           + 4 * (bias.size + wq8.size)
                           + 4 * b_pad),
    )

    out = pl.pallas_call(
        kernel,
        out_shape=jax.ShapeDtypeStruct((1, b_pad), jnp.float32),
        grid=(b_pad // b_tile,),
        in_specs=[
            pl.BlockSpec((b_tile, s_dim), lambda i: (i, 0)),   # state tile
            pl.BlockSpec((b_tile, a_dim), lambda i: (i, 0)),   # action tile
            pl.BlockSpec(w1.shape, lambda i: (0, 0)),          # resident weights
            pl.BlockSpec(w2.shape, lambda i: (0, 0)),
            pl.BlockSpec(wa.shape, lambda i: (0, 0)),
            pl.BlockSpec(bias.shape, lambda i: (0, 0)),
            pl.BlockSpec(wq8.shape, lambda i: (0, 0)),
        ],
        out_specs=pl.BlockSpec((1, b_tile), lambda i: (0, i)), # compact output
        compiler_params=pltpu.CompilerParams(
            dimension_semantics=("parallel",)),                 # 2 TCs on v7x
        cost_estimate=cost,
    )(state, action, w1, w2, wa, bias, wq8)

    # Contiguous reshape/slice of the compact (1, b_pad) row (no strided read).
    return out[0, :B].reshape(B, 1)


critic_forward = jax.jit(_critic_forward, static_argnames=("b_tile",))


def critic_ref(state, action, p):
    """Pure-JAX reference (highest precision) for correctness."""
    hp = lax.Precision.HIGHEST
    h1 = jax.nn.relu(jnp.dot(state, p["w1"], precision=hp) + p["b1"])
    sv = jnp.dot(h1, p["w2"], precision=hp) + p["b2"]
    av = jnp.dot(action, p["wa"], precision=hp) + p["ba"]
    sav = jax.nn.relu(sv + av)
    return jnp.dot(sav, p["wq"], precision=hp) + p["bq"]


if __name__ == "__main__":
    # Small shapes consistent with the module: input_dims=8, fc1=32, fc2=32, n_actions=4
    B, INPUT_DIMS, FC1, FC2, N_ACTIONS = 2, 8, 32, 32, 4

    key = jax.random.PRNGKey(0)
    k_params, k_s1, k_a1, k_s2, k_a2, k_s3, k_a3 = jax.random.split(key, 7)

    params = init_params(k_params, INPUT_DIMS, FC1, FC2, N_ACTIONS)
    # f32 matmuls for the strict check; pass matmul_dtype=jnp.bfloat16 for
    # production on v6e/v7x (accumulation / elementwise stay f32 either way).
    packed = pack_params(params)

    # 1) Tiny batch: single grid step, b_tile == B, zero padding, no concat.
    state = jax.random.normal(k_s1, (B, INPUT_DIMS), jnp.float32)
    action = jax.random.normal(k_a1, (B, N_ACTIONS), jnp.float32)
    out = jax.block_until_ready(critic_forward(state, action, packed))
    expected = critic_ref(state, action, params)
    assert out.shape == (B, 1), out.shape
    assert jnp.allclose(out, expected, atol=1e-4, rtol=1e-4), (out, expected)

    # 2) Replay-buffer batch: still a single grid step (no padding at all).
    B2 = 300
    state2 = jax.random.normal(k_s2, (B2, INPUT_DIMS), jnp.float32)
    action2 = jax.random.normal(k_a2, (B2, N_ACTIONS), jnp.float32)
    out2 = jax.block_until_ready(critic_forward(state2, action2, packed))
    expected2 = critic_ref(state2, action2, params)
    assert out2.shape == (B2, 1), out2.shape
    assert jnp.allclose(out2, expected2, atol=1e-4, rtol=1e-4), "single-tile mismatch"

    # 3) Large batch: 2-tile parallel grid (exercises v7x's 2nd TensorCore
    #    path) with a zero-padded tail tile that is sliced off on return.
    B3 = 600
    state3 = jax.random.normal(k_s3, (B3, INPUT_DIMS), jnp.float32)
    action3 = jax.random.normal(k_a3, (B3, N_ACTIONS), jnp.float32)
    out3 = jax.block_until_ready(critic_forward(state3, action3, packed))
    expected3 = critic_ref(state3, action3, params)
    assert out3.shape == (B3, 1), out3.shape
    assert jnp.allclose(out3, expected3, atol=1e-4, rtol=1e-4), "batch-grid mismatch"

    print("KERNEL_OK")
</pallas_src>

<mosaic_0001>
module attributes {stable_mosaic.version = 11 : i64} {
  func.func @critic_kernel(%arg0: i32, %arg1: memref<2x8xf32, #tpu.memory_space<vmem>>, %arg2: memref<2x4xf32, #tpu.memory_space<vmem>>, %arg3: memref<8x32xf32, #tpu.memory_space<vmem>>, %arg4: memref<32x32xf32, #tpu.memory_space<vmem>>, %arg5: memref<4x32xf32, #tpu.memory_space<vmem>>, %arg6: memref<8x32xf32, #tpu.memory_space<vmem>>, %arg7: memref<8x32xf32, #tpu.memory_space<vmem>>, %arg8: memref<1x2xf32, #tpu.memory_space<vmem>>) attributes {dimension_semantics = [#tpu.dimension_semantics<parallel>], iteration_bounds = array<i64: 1>, scalar_prefetch = 0 : i64, scratch_operands = 0 : i64, tpu.core_type = #tpu.core_type<tc>, window_params = [{transform_indices = @transform_0, window_bounds = array<i64: 2, 8>}, {transform_indices = @transform_1, window_bounds = array<i64: 2, 4>}, {pipeline_mode = #tpu.pipeline_mode<synchronous>, transform_indices = @transform_2, window_bounds = array<i64: 8, 32>}, {pipeline_mode = #tpu.pipeline_mode<synchronous>, transform_indices = @transform_3, window_bounds = array<i64: 32, 32>}, {pipeline_mode = #tpu.pipeline_mode<synchronous>, transform_indices = @transform_4, window_bounds = array<i64: 4, 32>}, {pipeline_mode = #tpu.pipeline_mode<synchronous>, transform_indices = @transform_5, window_bounds = array<i64: 8, 32>}, {pipeline_mode = #tpu.pipeline_mode<synchronous>, transform_indices = @transform_6, window_bounds = array<i64: 8, 32>}, {transform_indices = @transform_7, window_bounds = array<i64: 1, 2>}]} {
    %c0 = arith.constant 0 : index
    %c0_0 = arith.constant 0 : index
    %0 = vector.load %arg6[%c0, %c0_0] : memref<8x32xf32, #tpu.memory_space<vmem>>, vector<1x32xf32>
    %c1 = arith.constant 1 : index
    %c0_1 = arith.constant 0 : index
    %1 = vector.load %arg6[%c1, %c0_1] : memref<8x32xf32, #tpu.memory_space<vmem>>, vector<1x32xf32>
    %c2 = arith.constant 2 : index
    %c0_2 = arith.constant 0 : index
    %2 = vector.load %arg6[%c2, %c0_2] : memref<8x32xf32, #tpu.memory_space<vmem>>, vector<1x1xf32>
    %c0_3 = arith.constant 0 : index
    %c0_4 = arith.constant 0 : index
    %3 = vector.load %arg1[%c0_3, %c0_4] : memref<2x8xf32, #tpu.memory_space<vmem>>, vector<2x8xf32>
    %c0_5 = arith.constant 0 : index
    %c0_6 = arith.constant 0 : index
    %4 = vector.load %arg3[%c0_5, %c0_6] : memref<8x32xf32, #tpu.memory_space<vmem>>, vector<8x32xf32>
    %cst = arith.constant dense<0.000000e+00> : vector<2x32xf32>
    %5 = tpu.matmul %3, %4, %cst {dimension_numbers = #tpu.dot_dimension_numbers<[1], [0], [0], [1], [0, 0, 1, 1], [], []>} : vector<2x8xf32>, vector<8x32xf32>, vector<2x32xf32> -> vector<2x32xf32>
    %6 = vector.broadcast %0 : vector<1x32xf32> to vector<2x32xf32>
    %7 = arith.addf %5, %6 : vector<2x32xf32>
    %cst_7 = arith.constant 0.000000e+00 : f32
    %8 = vector.broadcast %cst_7 : f32 to vector<2x32xf32>
    %9 = arith.maximumf %7, %8 : vector<2x32xf32>
    %c0_8 = arith.constant 0 : index
    %c0_9 = arith.constant 0 : index
    %10 = vector.load %arg4[%c0_8, %c0_9] : memref<32x32xf32, #tpu.memory_space<vmem>>, vector<32x32xf32>
    %cst_10 = arith.constant dense<0.000000e+00> : vector<2x32xf32>
    %11 = tpu.matmul %9, %10, %cst_10 {dimension_numbers = #tpu.dot_dimension_numbers<[1], [0], [0], [1], [0, 0, 1, 1], [], []>} : vector<2x32xf32>, vector<32x32xf32>, vector<2x32xf32> -> vector<2x32xf32>
    %c0_11 = arith.constant 0 : index
    %c0_12 = arith.constant 0 : index
    %12 = vector.load %arg2[%c0_11, %c0_12] : memref<2x4xf32, #tpu.memory_space<vmem>>, vector<2x4xf32>
    %c0_13 = arith.constant 0 : index
    %c0_14 = arith.constant 0 : index
    %13 = vector.load %arg5[%c0_13, %c0_14] : memref<4x32xf32, #tpu.memory_space<vmem>>, vector<4x32xf32>
    %cst_15 = arith.constant dense<0.000000e+00> : vector<2x32xf32>
    %14 = tpu.matmul %12, %13, %cst_15 {dimension_numbers = #tpu.dot_dimension_numbers<[1], [0], [0], [1], [0, 0, 1, 1], [], []>} : vector<2x4xf32>, vector<4x32xf32>, vector<2x32xf32> -> vector<2x32xf32>
    %15 = arith.addf %11, %14 : vector<2x32xf32>
    %16 = vector.broadcast %1 : vector<1x32xf32> to vector<2x32xf32>
    %17 = arith.addf %15, %16 : vector<2x32xf32>
    %cst_16 = arith.constant 0.000000e+00 : f32
    %18 = vector.broadcast %cst_16 : f32 to vector<2x32xf32>
    %19 = arith.maximumf %17, %18 : vector<2x32xf32>
    %c0_17 = arith.constant 0 : index
    %c0_18 = arith.constant 0 : index
    %20 = vector.load %arg7[%c0_17, %c0_18] : memref<8x32xf32, #tpu.memory_space<vmem>>, vector<8x32xf32>
    %cst_19 = arith.constant dense<0.000000e+00> : vector<8x2xf32>
    %21 = tpu.matmul %20, %19, %cst_19 {dimension_numbers = #tpu.dot_dimension_numbers<[1], [1], [0], [0], [0, 0, 1, 0], [], []>} : vector<8x32xf32>, vector<2x32xf32>, vector<8x2xf32> -> vector<8x2xf32>
    %22 = vector.extract_strided_slice %21 {offsets = [0, 0], sizes = [1, 2], strides = [1, 1]} : vector<8x2xf32> to vector<1x2xf32>
    %23 = vector.broadcast %2 : vector<1x1xf32> to vector<1x2xf32>
    %24 = arith.addf %22, %23 : vector<1x2xf32>
    %c0_20 = arith.constant 0 : index
    %c0_21 = arith.constant 0 : index
    %25 = vector.load %arg8[%c0_20, %c0_21] : memref<1x2xf32, #tpu.memory_space<vmem>>, vector<1x2xf32>
    tpu.vector_store %arg8[%c0_20, %c0_21], %24 {strides = array<i32>} : memref<1x2xf32, #tpu.memory_space<vmem>>, vector<1x2xf32>,
    return
  }
  func.func @transform_0(%arg0: i32) -> (i32, i32) {
    %c0_i32 = arith.constant 0 : i32
    %c0_i32_0 = arith.constant 0 : i32
    return %arg0, %c0_i32 : i32, i32
  }
  func.func @transform_1(%arg0: i32) -> (i32, i32) {
    %c0_i32 = arith.constant 0 : i32
    %c0_i32_0 = arith.constant 0 : i32
    return %arg0, %c0_i32 : i32, i32
  }
  func.func @transform_2(%arg0: i32) -> (i32, i32) {
    %c0_i32 = arith.constant 0 : i32
    %c0_i32_0 = arith.constant 0 : i32
    %c0_i32_1 = arith.constant 0 : i32
    return %c0_i32, %c0_i32_0 : i32, i32
  }
  func.func @transform_3(%arg0: i32) -> (i32, i32) {
    %c0_i32 = arith.constant 0 : i32
    %c0_i32_0 = arith.constant 0 : i32
    %c0_i32_1 = arith.constant 0 : i32
    return %c0_i32, %c0_i32_0 : i32, i32
  }
  func.func @transform_4(%arg0: i32) -> (i32, i32) {
    %c0_i32 = arith.constant 0 : i32
    %c0_i32_0 = arith.constant 0 : i32
    %c0_i32_1 = arith.constant 0 : i32
    return %c0_i32, %c0_i32_0 : i32, i32
  }
  func.func @transform_5(%arg0: i32) -> (i32, i32) {
    %c0_i32 = arith.constant 0 : i32
    %c0_i32_0 = arith.constant 0 : i32
    %c0_i32_1 = arith.constant 0 : i32
    return %c0_i32, %c0_i32_0 : i32, i32
  }
  func.func @transform_6(%arg0: i32) -> (i32, i32) {
    %c0_i32 = arith.constant 0 : i32
    %c0_i32_0 = arith.constant 0 : i32
    %c0_i32_1 = arith.constant 0 : i32
    return %c0_i32, %c0_i32_0 : i32, i32
  }
  func.func @transform_7(%arg0: i32) -> (i32, i32) {
    %c0_i32 = arith.constant 0 : i32
    %c0_i32_0 = arith.constant 0 : i32
    return %c0_i32, %arg0 : i32, i32
  }
}

</mosaic_0001>

<bundles_post_ra>
// kernel: _critic_forward.1
= control target key start
LH: loop header
LB: loop body
LE: loop exit
PB: predicated region body
PF: predicated region fallthrough
CT: control target
= control target key end

     0   :  { %12 = vsyncpa [#allocation3], 0  ;;  %s734_s0 = inlined_call_operand.hbm [shape: f32[2,8], index: 0, kind: input, shape index: {}]   ;;  %s735_s1 = inlined_call_operand.vmem [shape: f32[2,4], index: 1, kind: input, shape index: {}]   ;;  %s736_s2 = inlined_call_operand.vmem [shape: f32[8,32], index: 2, kind: input, shape index: {}]   ;;  %s737_s3 = inlined_call_operand.hbm [shape: f32[32,32], index: 3, kind: input, shape index: {}]   ;;  %s738_s4 = inlined_call_operand.hbm [shape: f32[4,32], index: 4, kind: input, shape index: {}]   ;;  %s739_s5 = inlined_call_operand.hbm [shape: f32[8,32], index: 5, kind: input, shape index: {}]   ;;  %s740_s6 = inlined_call_operand.vmem [shape: f32[8,32], index: 6, kind: input, shape index: {}]   ;;  %s741_s7 = inlined_call_operand.hbm [shape: f32[1,2], index: 7, kind: output, shape index: {}]  }
   0x1   :  { %13 = vsyncpa [#allocation6], 0 }
   0x2   :  { %14 = vsyncpa [#allocation9], 0 }
   0x3   :  { %15 = vsyncpa [#allocation4], 0  ;;  %s607_s24 = smov [#allocation5]   ;;  %s489_s28 = scalar_lea.hbm %s737_s3, 512 }
   0x4   :  { %s35_s25 = sshll.u32 %s607_s24, 4  ;;  %p490_p0 = scmp.ne.s32.totalorder %s737_s3, %s489_s28  ;;  %s36_s25 = int_to_ptr.vmem [resolvable:$true] %s35_s25 }
   0x5   :  { %p493_p1 = scmp.lt.u32.totalorder %s489_s28, %s737_s3 }
   0x7   :  { %p495_p2 = pnand %p493_p1, %p490_p0 }
   0x9   :  { %498 = shalt.err (!%p495_p2)
}
   0xa   :  { %s499_s10 = scalar_lea.vmem %s36_s25, 512  ;;  %p504_p4 = scmp.lt.s32.totalorder %s36_s25, %s36_s25 }
   0xb   :  { %p500_p3 = scmp.ne.s32.totalorder %s36_s25, %s499_s10  ;;  %p505_p5 = scmp.lt.s32.totalorder %s499_s10, %s499_s10 }
   0xd   :  { %p506_p6 = por %p505_p5, %p504_p4 }
   0xf   :  { %p507_p7 = pnand %p506_p6, %p500_p3 }
  0x11   :  { %510 = shalt.err (!%p507_p7)
}
  0x12   :  { %s608_s11 = smov 128   ;;  %s609_s12 = smov 8  }
  0x13   :  { %41 = dma.hbm_to_vmem [thread:$0]  %s737_s3, 512, %s36_s25, [#allocation6], %s608_s11, %s608_s11, %s609_s12  }
  0x14   :  { %s610_s15 = smov [#allocation2]   ;;  %s611_s17 = smov [#allocation7]  }
  0x15   :  { %s22_s16 = sshll.u32 %s610_s15, 4  ;;  %s48_s18 = sshll.u32 %s611_s17, 4  ;;  %s23_s16 = int_to_ptr.vmem [resolvable:$true] %s22_s16  ;;  %s49_s18 = int_to_ptr.vmem [resolvable:$true] %s48_s18 }
  0x16   :  { %s511_s21 = scalar_lea.hbm %s734_s0, 32 }
  0x17   :  { %p512_p8 = scmp.ne.s32.totalorder %s734_s0, %s511_s21  ;;  %p515_p9 = scmp.lt.u32.totalorder %s511_s21, %s734_s0 }
  0x19   :  { %p517_p10 = pnand %p515_p9, %p512_p8 }
  0x1b   :  { %520 = shalt.err (!%p517_p10)
}
  0x1c   :  { %s521_s3 = scalar_lea.vmem %s23_s16, 32  ;;  %p526_p12 = scmp.lt.s32.totalorder %s23_s16, %s23_s16 }
  0x1d   :  { %p522_p11 = scmp.ne.s32.totalorder %s23_s16, %s521_s3  ;;  %p527_p13 = scmp.lt.s32.totalorder %s521_s3, %s521_s3 }
  0x1f   :  { %p528_p0 = por %p527_p13, %p526_p12 }
  0x21   :  { %p529_p1 = pnand %p528_p0, %p522_p11 }
  0x23   :  { %532 = shalt.err (!%p529_p1)
}
  0x24   :  { %25 = dma.hbm_to_vmem [thread:$0]  %s734_s0, 32, %s23_s16, [#allocation3]  }
  0x25   :  { %s533_s30 = scalar_lea.hbm %s738_s4, 64 }
  0x26   :  { %p534_p2 = scmp.ne.s32.totalorder %s738_s4, %s533_s30  ;;  %p537_p3 = scmp.lt.u32.totalorder %s533_s30, %s738_s4 }
  0x28   :  { %p539_p4 = pnand %p537_p3, %p534_p2 }
  0x2a   :  { %542 = shalt.err (!%p539_p4)
}
  0x2b   :  { %s543_s12 = scalar_lea.vmem %s49_s18, 64  ;;  %p548_p6 = scmp.lt.s32.totalorder %s49_s18, %s49_s18 }
  0x2c   :  { %p544_p5 = scmp.ne.s32.totalorder %s49_s18, %s543_s12  ;;  %p549_p7 = scmp.lt.s32.totalorder %s543_s12, %s543_s12 }
  0x2e   :  { %p550_p8 = por %p549_p7, %p548_p6 }
  0x30   :  { %p551_p9 = pnand %p550_p8, %p544_p5 }
  0x32   :  { %554 = shalt.err (!%p551_p9)
}
  0x33   :  { %51 = dma.hbm_to_vmem [thread:$0]  %s738_s4, 64, %s49_s18, [#allocation6]  }
  0x34   :  { %s612_s14 = smov [#allocation8]   ;;  %s555_s19 = scalar_lea.hbm %s739_s5, 128 }
  0x35   :  { %s58_s15 = sshll.u32 %s612_s14, 4  ;;  %p556_p10 = scmp.ne.s32.totalorder %s739_s5, %s555_s19  ;;  %s59_s15 = int_to_ptr.vmem [resolvable:$true] %s58_s15 }
  0x36   :  { %p559_p11 = scmp.lt.u32.totalorder %s555_s19, %s739_s5 }
  0x38   :  { %p561_p12 = pnand %p559_p11, %p556_p10 }
  0x3a   :  { %564 = shalt.err (!%p561_p12)
}
  0x3b   :  { %s565_s24 = scalar_lea.vmem %s59_s15, 128  ;;  %p570_p0 = scmp.lt.s32.totalorder %s59_s15, %s59_s15 }
  0x3c   :  { %p566_p13 = scmp.ne.s32.totalorder %s59_s15, %s565_s24  ;;  %p571_p1 = scmp.lt.s32.totalorder %s565_s24, %s565_s24 }
  0x3e   :  { %p572_p2 = por %p571_p1, %p570_p0 }
  0x40   :  { %p573_p3 = pnand %p572_p2, %p566_p13 }
  0x42   :  { %576 = shalt.err (!%p573_p3)
}
  0x43   :  { %61 = dma.hbm_to_vmem [thread:$0]  %s739_s5, 128, %s59_s15, [#allocation9]  }
  0x44   :  { %599 = dma.done.wait [#allocation3], 32  }
  0x45   :  { %600 = vsyncadd [#allocation3], 4294967264 }
  0x46   :  { %601 = dma.done.wait [#allocation6], 576  }
  0x47   :  { %602 = vsyncadd [#allocation6], 4294966720 }
  0x48   :  { %603 = dma.done.wait [#allocation9], 128  }
  0x49   :  { %604 = vsyncadd [#allocation9], 4294967168  ;;  %v613_v0 = vmov 0.0   ;;  %vm614_vm0 = vmmov 0   ;;  %vm85_vm1 = vcmask 64512   ;;  %v80_v1 = vld [vmem:[%s736_s2] sm:$0xff] }
  0x4a   :  { %445 = vmatprep.subr.mxu0 %v613_v0  ;;  %447 = vmatprep.mubr.msk.f32.mxu0 %vm614_vm0, %v613_v0  ;;  %v79_v2 = vld [vmem:[#allocation2] sm:$0x3]  ;;  %v160_v3 = vld [vmem:[#allocation5] sm:$0xff]  ;;  %v161_v4 = vld [vmem:[#allocation5 + $0x8] sm:$0xff]  ;;  %v615_v5 = vmov 0.0|0.0   ;;  %vm170_vm2 = vcmask 1043456  }
  0x4b   :  { %450 = vmatprep.subr.mxu1 %v613_v0  ;;  %452 = vmatprep.mubr.msk.f32.mxu1 %vm614_vm0, %v613_v0  ;;  %v472_v6 = vpack.c.bf16 %v161_v4, %v160_v3  ;;  %v162_v7 = vld [vmem:[#allocation5 + $0x10] sm:$0xff]  ;;  %v163_v8 = vld [vmem:[#allocation5 + $0x18] sm:$0xff]  ;;  %v165_v10 = vld [vmem:[#allocation7] sm:$0xf]  ;;  %vm166_vm3 = vcmask 31744   ;;  %vm244_vm4 = vcmask 261120  }
  0x4c   :  { %446 = vmatpush3.msra.mxu0 %v80_v1  ;;  %v475_v9 = vpack.c.bf16 %v163_v8, %v162_v7  ;;  %451 = vmatpush3.msk.msra.mxu1 %vm170_vm2, %v165_v10  ;;  %v164_v11 = vld [vmem:[%s735_s1] sm:$0x3]  ;;  %v426_v12 = vld [vmem:[#allocation8] ss:$0 sm:$0xff]  ;;  %v78_v19 = vld [vmem:[#allocation8 + $0x2] sm:$0x1] }
  0x4d   :  { %448 = vmatmul.mubr.msk.f32.vlgmr.msra.gmra.mrb[0].mxu0 %vm85_vm1, %v79_v2  ;;  %471 = vmatprep.subr.bf16.mxu0 %v615_v5  ;;  %v616_v20 = vmov 0   ;;  %v431_v21 = vld [vmem:[#allocation8 + $0x1] ss:$0 sm:$0xff]  ;;  %v324_v27 = vld [vmem:[%s740_s6] sm:$0xff]  ;;  %s617_s27 = smov [#allocation10]   ;;  %vm407_vm5 = vcmask 8192  }
  0x4e   :  { %463 = vmatprep.mubr.msk.f32.mxu0 %vm614_vm0, %v613_v0  ;;  %473 = vmatpush3.bf16.msra.mxu0 %v472_v6  ;;  %s415_s28 = sshll.u32 %s617_s27, 4  ;;  %s416_s28 = int_to_ptr.vmem [resolvable:$true] %s415_s28 }
  0x4f   :  { %474 = vmatprep.subr.bf16.mxu0 %v615_v5  ;;  %453 = vmatmul.mubr.msk.f32.vlgmr.msra.gmra.mrb[0].mxu1 %vm166_vm3, %v164_v11  ;;  %s577_s29 = scalar_lea.vmem %s416_s28, 16  ;;  %s581_s30 = scalar_lea.vmem %s416_s28, 32 }
  0x50   :  { %466 = vmatprep.subr.mxu1 %v613_v0  ;;  %468 = vmatprep.mubr.msk.f32.mxu1 %vm614_vm0, %v613_v0  ;;  %p578_p4 = scmp.ne.s32.totalorder %s416_s28, %s577_s29  ;;  %p582_p5 = scmp.lt.s32.totalorder %s416_s28, %s416_s28 }
  0x51   :  { %488 = vset.pattern.permute.xlu0 %v616_v20  ;;  %p583_p6 = scmp.lt.s32.totalorder %s581_s30, %s577_s29 }
  0x52   :  { %476 = vmatpush3.bf16.msra.mxu0 %v475_v9  ;;  %403 = vperm.xlu0 %488, %v78_v19  }
  0x53   :  { %p584_p7 = por %p583_p6, %p582_p5 }
  0x55   :  { %p585_p8 = pnand %p584_p7, %p578_p4 }
  0xd1   :  { %v404_v28 = vpop.permute.xlu0 %403 }
 0x120   :  { %v155_v13 = vpop.f32.mrb[0].mxu0 }
 0x121   :  { %v156_v14 = vadd.f32 %v426_v12, %v155_v13  ;;  %v449_v15 = vpop.f32.mrb[1].mxu0 }
 0x122   :  { %v240_v17 = vpop.f32.mrb[0].mxu1 }
 0x123   :  { %v159_v16 = vmax.f32 %v156_v14, 0.0  ;;  %v454_v18 = vpop.f32.mrb[1].mxu1 }
 0x125   :  { %464 = vmatmul.mubr.msk.f32.vlgmr.msra.gmra.mrb[2].mxu0 %vm244_vm4, %v159_v16 }
 0x1f8   :  { %v314_v22 = vpop.f32.mrb[2].mxu0 }
 0x1f9   :  { %v315_v23 = vadd.f32 %v314_v22, %v240_v17  ;;  %v465_v24 = vpop.f32.mrb[3].mxu0 }
 0x1fb   :  { %v322_v25 = vadd.f32 %v431_v21, %v315_v23 }
 0x1fd   :  { %v323_v26 = vmax.f32 %v322_v25, 0.0 }
 0x1ff   :  { %467 = vmatpush3.xpose.msk.msra.mxu1 %vm244_vm4, %v323_v26 }
 0x202   :  { %469 = vmatmul.mubr.msk.f32.vlgmr.msra.gmra.mrb[2].mxu1 %vm244_vm4, %v324_v27 }
 0x2d5   :  { %v397_v29 = vpop.f32.mrb[2].mxu1 }
 0x2d6   :  { %v406_v30 = vadd.f32 %v404_v28, %v397_v29  ;;  %v470_v31 = vpop.f32.mrb[3].mxu1 }
 0x2d8   :  { %408 = vst.msk [vmem:[#allocation10] sm:$0x1] %vm407_vm5, %v406_v30 }
 0x2d9   :  { %588 = shalt.err (!%p585_p8)
}
 0x2da   :  { %s589_s9 = scalar_lea.hbm %s741_s7, 16 }
 0x2db   :  { %p590_p9 = scmp.ne.s32.totalorder %s741_s7, %s589_s9  ;;  %p593_p10 = scmp.lt.u32.totalorder %s589_s9, %s741_s7 }
 0x2dd   :  { %p595_p11 = pnand %p593_p10, %p590_p9 }
 0x2df   :  { %598 = shalt.err (!%p595_p11)
}
 0x2e0   :  { %418 = dma.vmem_to_hbm [thread:$0]  %s416_s28, 16, %s741_s7, [#allocation4]  }
 0x2e1   :  { %605 = dma.done.wait [#allocation4], 16  }
 0x2e2   :  { %606 = vsyncadd [#allocation4], 4294967280 }
 0x2e3   :  { %422 = vsyncpa [#allocation3], 1 }
 0x2e4   :  { %423 = vsyncpa [#allocation6], 1 }
 0x2e5   :  { %424 = vsyncpa [#allocation9], 1 }
 0x2e6   :  { %425 = vsyncpa [#allocation4], 1 }

</bundles_post_ra>
